<compile_context>
chip_gen: v5e
topology: v5e:2x2
jax: 0.10.0
libtpu: 0.0.40
codegen_flags: <defaults>
</compile_context>

<pallas_src>
import math

import jax
import jax.numpy as jnp
from jax.experimental import pallas as pl
from jax.experimental.pallas import tpu as pltpu

LANE = 128
SUBLANE = 8


def exponential_linspace_int(start, end, num, divisible_by=1):
    def _round(x):
        return int(round(x / divisible_by) * divisible_by)

    base = math.exp(math.log(end / start) / (num - 1))
    return [_round(start * base ** i) for i in range(num)]


def _round_up(x, m):
    return (x + m - 1) // m * m


def make_fpn_kernel(depth):
    """Whole eval-mode FPN forward for one (TB, 128) batch tile.

    refs:
      x_ref    (TB, 128)              input tile, zero-padded past in_dim, f32
      wpyr_ref (depth, 128, 128)      pyramid Linear weights (bf16 or f32), zero-padded
      bias_ref (bias_rows, 128)  f32  rows 0..depth-1: pyramid biases,
                                      row depth: BN-folded bm, row depth+1: bo
      wm_ref   ((depth+1)*128, 128)   BN-folded body Linear-1 weight; segment s's
                                      rows live at offset s*128
      wo_ref   (128, 128)             body Linear-2 weight, zero-padded
      out_ref  (TB, 128)         f32  lane-dense output, sliced outside
    """

    def kernel(x_ref, wpyr_ref, bias_ref, wm_ref, wo_ref, out_ref):
        wdt = wpyr_ref.dtype                     # bf16 (perf) or f32 (debug build)
        h = x_ref[...]                           # f32 activations throughout

        # Fused body Linear-1 accumulator: segment 0 is x itself.
        acc = jnp.dot(h.astype(wdt), wm_ref[0:LANE, :],
                      preferred_element_type=jnp.float32)

        # Pyramid: Linear + ReLU, each followed immediately by its Wm-segment
        # contribution (independent of the next pyramid matmul -> back-to-back MXU).
        for i in range(depth):
            w = wpyr_ref[i]                      # (128, 128)
            b = bias_ref[i:i + 1, :]             # (1, 128), f32
            h = jnp.maximum(
                jnp.dot(h.astype(wdt), w, preferred_element_type=jnp.float32) + b,
                0.0)
            acc = acc + jnp.dot(h.astype(wdt),
                                wm_ref[(i + 1) * LANE:(i + 2) * LANE, :],
                                preferred_element_type=jnp.float32)

        # Body: (BN already folded into Wm/bm) bias + ReLU, then Linear(mid, out).
        bm = bias_ref[depth:depth + 1, :]
        hm = jnp.maximum(acc + bm, 0.0)

        bo = bias_ref[depth + 1:depth + 2, :]
        out_ref[...] = jnp.dot(hm.astype(wdt), wo_ref[...],
                               preferred_element_type=jnp.float32) + bo

    return kernel


def _linear_init(key, fan_in, fan_out):
    # Mimics PyTorch's U(-1/sqrt(fan_in), 1/sqrt(fan_in)) init (weights pre-transposed
    # to [in, out] so the kernel computes y = x @ W + b).
    kw, kb = jax.random.split(key)
    bound = 1.0 / math.sqrt(fan_in)
    w = jax.random.uniform(kw, (fan_in, fan_out), jnp.float32, -bound, bound)
    b = jax.random.uniform(kb, (1, fan_out), jnp.float32, -bound, bound)
    return w, b


def init_params(key, in_dim, hidden_dim, out_dim, depth):
    layer_dims = exponential_linspace_int(in_dim, hidden_dim, depth + 1)
    seg_dims = [in_dim] + layer_dims[1:]
    cat_dim = sum(seg_dims)
    mid_dim = (cat_dim + out_dim) // 2

    keys = jax.random.split(key, depth + 6)
    pyramid = [_linear_init(keys[i], layer_dims[i], layer_dims[i + 1])
               for i in range(depth)]
    wm, bm = _linear_init(keys[depth], cat_dim, mid_dim)
    wo, bo = _linear_init(keys[depth + 1], mid_dim, out_dim)

    # Randomized eval-mode BN running stats so the BN-folding path is exercised
    # by the self-test (init-default stats would make BN the identity).
    gamma = jax.random.uniform(keys[depth + 2], (cat_dim,), jnp.float32, 0.5, 1.5)
    beta = jax.random.uniform(keys[depth + 3], (cat_dim,), jnp.float32, -0.5, 0.5)
    mean = jax.random.normal(keys[depth + 4], (cat_dim,), jnp.float32) * 0.3
    var = jax.random.uniform(keys[depth + 5], (cat_dim,), jnp.float32, 0.5, 2.0)

    return dict(layer_dims=layer_dims, seg_dims=seg_dims, cat_dim=cat_dim,
                mid_dim=mid_dim, in_dim=in_dim, out_dim=out_dim, depth=depth,
                pyramid=pyramid, wm=wm, bm=bm, wo=wo, bo=bo,
                gamma=gamma, beta=beta, mean=mean, var=var)


def pack_params(params, eps=1e-5, weight_dtype=jnp.bfloat16):
    """One-time packing: fold eval-mode BN into (Wm, bm), zero-pad everything into a
    handful of (8,128)-aligned slabs, and cast the weight slabs to `weight_dtype`
    (bf16 by default; biases stay f32).  Done at init, not per forward call."""
    depth = params["depth"]
    seg_dims = params["seg_dims"]
    n_seg = depth + 1
    mid_dim = params["mid_dim"]
    out_dim = params["out_dim"]
    assert max(seg_dims) <= LANE and mid_dim <= LANE and out_dim <= LANE, \
        "packing assumes every segment width, mid_dim and out_dim <= 128"

    # Fold BN (running stats):  BN(c) @ Wm + bm == c @ (scale*Wm) + (shift @ Wm + bm)
    scale = params["gamma"] * jax.lax.rsqrt(params["var"] + eps)      # (cat_dim,)
    shift = params["beta"] - params["mean"] * scale                   # (cat_dim,)
    wm_f = params["wm"] * scale[:, None]                              # (cat, mid) f32
    bm_f = params["bm"][0] + shift @ params["wm"]                     # (mid,) f32

    # Pyramid weights -> one (depth, 128, 128) slab.
    wpyr = jnp.zeros((depth, LANE, LANE), jnp.float32)
    for i, (w, _) in enumerate(params["pyramid"]):
        wpyr = wpyr.at[i, :w.shape[0], :w.shape[1]].set(w)

    # All biases -> one (>=8, 128) f32 slab (bias/ReLU math stays f32).
    bias_rows = _round_up(depth + 2, SUBLANE)
    bias = jnp.zeros((bias_rows, LANE), jnp.float32)
    for i, (_, b) in enumerate(params["pyramid"]):
        bias = bias.at[i, :b.shape[1]].set(b[0])
    bias = bias.at[depth, :mid_dim].set(bm_f)
    bias = bias.at[depth + 1, :out_dim].set(params["bo"][0])

    # Folded Wm -> (n_seg*128, 128): segment s rows at offset s*128 (matches the
    # per-segment accumulation the kernel does in its fused pyramid loop).
    wm_pad = jnp.zeros((n_seg * LANE, LANE), jnp.float32)
    off = 0
    for s, d in enumerate(seg_dims):
        wm_pad = wm_pad.at[s * LANE:s * LANE + d, :mid_dim].set(wm_f[off:off + d])
        off += d

    wo_pad = jnp.zeros((LANE, LANE), jnp.float32)
    wo_pad = wo_pad.at[:mid_dim, :out_dim].set(params["wo"])

    return dict(depth=depth, n_seg=n_seg, in_dim=params["in_dim"],
                out_dim=out_dim, bias_rows=bias_rows,
                wpyr=wpyr.astype(weight_dtype),
                bias=bias,                       # f32
                wm=wm_pad.astype(weight_dtype),
                wo=wo_pad.astype(weight_dtype))


def fpn_forward(x, packed, tb=256):
    """Batch-gridded forward.  TB rows per grid step (>=256 fills the v6e/v7x MXU M
    dim at real batch sizes; clamped down for tiny batches).  Weights are DMA'd once
    and stay VMEM-resident; x/out tiles are double-buffered by the Pallas pipeline."""
    depth = packed["depth"]
    n_seg = packed["n_seg"]
    in_dim = packed["in_dim"]
    out_dim = packed["out_dim"]
    bias_rows = packed["bias_rows"]
    assert in_dim <= LANE, "forward assumes in_dim <= 128"

    B = x.shape[0]
    TB = _round_up(min(tb, max(B, SUBLANE)), SUBLANE)
    Bp = _round_up(max(B, TB), TB)
    xp = jnp.zeros((Bp, LANE), jnp.float32).at[:B, :in_dim].set(x)

    kernel = make_fpn_kernel(depth)
    out = pl.pallas_call(
        kernel,
        out_shape=jax.ShapeDtypeStruct((Bp, LANE), jnp.float32),
        grid=(Bp // TB,),
        in_specs=[
            pl.BlockSpec((TB, LANE), lambda i: (i, 0)),                 # x tile
            pl.BlockSpec((depth, LANE, LANE), lambda i: (0, 0, 0)),     # wpyr (resident)
            pl.BlockSpec((bias_rows, LANE), lambda i: (0, 0)),          # biases (resident)
            pl.BlockSpec((n_seg * LANE, LANE), lambda i: (0, 0)),       # folded Wm (resident)
            pl.BlockSpec((LANE, LANE), lambda i: (0, 0)),               # Wo (resident)
        ],
        out_specs=pl.BlockSpec((TB, LANE), lambda i: (i, 0)),
        compiler_params=pltpu.CompilerParams(
            dimension_semantics=("parallel",)),
    )(xp, packed["wpyr"], packed["bias"], packed["wm"], packed["wo"])
    return out[:B, :out_dim]


def reference_forward(x, params, eps=1e-5):
    # Pure-JAX reference of the eval-mode FPN forward (unfolded BN, f32).
    feats = [x]
    h = x
    for w, b in params["pyramid"]:
        h = jnp.maximum(h @ w + b, 0.0)
        feats.append(h)
    cat = jnp.concatenate(feats, axis=-1)
    xb = (cat - params["mean"]) * jax.lax.rsqrt(params["var"] + eps) \
         * params["gamma"] + params["beta"]
    hm = jnp.maximum(xb @ params["wm"] + params["bm"], 0.0)
    return hm @ params["wo"] + params["bo"]


if __name__ == "__main__":
    in_dim, hidden_dim, out_dim, depth = 32, 8, 16, 3
    batch = 8

    key = jax.random.PRNGKey(0)
    kx, kp = jax.random.split(key)
    x = jax.random.normal(kx, (batch, in_dim), jnp.float32)
    params = init_params(kp, in_dim, hidden_dim, out_dim, depth)
    ref = reference_forward(x, params)

    # f32 debug build: exact vs reference (tight tolerance), single grid step.
    packed_f32 = pack_params(params, weight_dtype=jnp.float32)
    out_f32 = jax.block_until_ready(fpn_forward(x, packed_f32))
    assert out_f32.shape == (batch, out_dim)
    assert jnp.allclose(out_f32, ref, rtol=1e-4, atol=1e-4), \
        "f32 kernel mismatch vs JAX reference"

    # bf16 perf build: bf16 matmul operands, f32 accumulate/bias/ReLU (loosened tol).
    packed_bf16 = pack_params(params, weight_dtype=jnp.bfloat16)
    out_bf16 = jax.block_until_ready(fpn_forward(x, packed_bf16))
    assert out_bf16.shape == (batch, out_dim)
    assert jnp.allclose(out_bf16, ref, rtol=5e-2, atol=5e-2), \
        "bf16 kernel mismatch vs JAX reference"

    # Multi-step grid exercise: batch not equal to TB, TB=8 -> grid=(3,).
    x_big = jax.random.normal(jax.random.PRNGKey(1), (24, in_dim), jnp.float32)
    out_big = jax.block_until_ready(fpn_forward(x_big, packed_bf16, tb=8))
    ref_big = reference_forward(x_big, params)
    assert out_big.shape == (24, out_dim)
    assert jnp.allclose(out_big, ref_big, rtol=5e-2, atol=5e-2), \
        "gridded bf16 kernel mismatch vs JAX reference"

    print("KERNEL_OK")
</pallas_src>

<mosaic_0001>
module attributes {stable_mosaic.version = 11 : i64} {
  func.func @kernel(%arg0: i32, %arg1: memref<8x128xf32, #tpu.memory_space<vmem>>, %arg2: memref<3x128x128xf32, #tpu.memory_space<vmem>>, %arg3: memref<8x128xf32, #tpu.memory_space<vmem>>, %arg4: memref<512x128xf32, #tpu.memory_space<vmem>>, %arg5: memref<128x128xf32, #tpu.memory_space<vmem>>, %arg6: memref<8x128xf32, #tpu.memory_space<vmem>>) attributes {dimension_semantics = [#tpu.dimension_semantics<parallel>], iteration_bounds = array<i64: 1>, scalar_prefetch = 0 : i64, scratch_operands = 0 : i64, tpu.core_type = #tpu.core_type<tc>, window_params = [{transform_indices = @transform_0, window_bounds = array<i64: 8, 128>}, {pipeline_mode = #tpu.pipeline_mode<synchronous>, transform_indices = @transform_1, window_bounds = array<i64: 3, 128, 128>}, {pipeline_mode = #tpu.pipeline_mode<synchronous>, transform_indices = @transform_2, window_bounds = array<i64: 8, 128>}, {pipeline_mode = #tpu.pipeline_mode<synchronous>, transform_indices = @transform_3, window_bounds = array<i64: 512, 128>}, {pipeline_mode = #tpu.pipeline_mode<synchronous>, transform_indices = @transform_4, window_bounds = array<i64: 128, 128>}, {transform_indices = @transform_5, window_bounds = array<i64: 8, 128>}]} {
    %c0 = arith.constant 0 : index
    %c0_0 = arith.constant 0 : index
    %0 = vector.load %arg1[%c0, %c0_0] : memref<8x128xf32, #tpu.memory_space<vmem>>, vector<8x128xf32>
    %c0_1 = arith.constant 0 : index
    %c0_2 = arith.constant 0 : index
    %1 = vector.load %arg4[%c0_1, %c0_2] : memref<512x128xf32, #tpu.memory_space<vmem>>, vector<128x128xf32>
    %cst = arith.constant dense<0.000000e+00> : vector<8x128xf32>
    %2 = tpu.matmul %0, %1, %cst {dimension_numbers = #tpu.dot_dimension_numbers<[1], [0], [0], [1], [0, 0, 1, 1], [], []>} : vector<8x128xf32>, vector<128x128xf32>, vector<8x128xf32> -> vector<8x128xf32>
    %c0_3 = arith.constant 0 : index
    %c0_4 = arith.constant 0 : index
    %c0_5 = arith.constant 0 : index
    %3 = vector.load %arg2[%c0_3, %c0_4, %c0_5] : memref<3x128x128xf32, #tpu.memory_space<vmem>>, vector<1x128x128xf32>
    %4 = vector.shape_cast %3 : vector<1x128x128xf32> to vector<128x128xf32>
    %c0_6 = arith.constant 0 : index
    %c0_7 = arith.constant 0 : index
    %5 = vector.load %arg3[%c0_6, %c0_7] : memref<8x128xf32, #tpu.memory_space<vmem>>, vector<1x128xf32>
    %cst_8 = arith.constant dense<0.000000e+00> : vector<8x128xf32>
    %6 = tpu.matmul %0, %4, %cst_8 {dimension_numbers = #tpu.dot_dimension_numbers<[1], [0], [0], [1], [0, 0, 1, 1], [], []>} : vector<8x128xf32>, vector<128x128xf32>, vector<8x128xf32> -> vector<8x128xf32>
    %7 = vector.broadcast %5 : vector<1x128xf32> to vector<8x128xf32>
    %8 = arith.addf %6, %7 : vector<8x128xf32>
    %cst_9 = arith.constant 0.000000e+00 : f32
    %9 = vector.broadcast %cst_9 : f32 to vector<8x128xf32>
    %10 = arith.maximumf %8, %9 : vector<8x128xf32>
    %c128 = arith.constant 128 : index
    %c0_10 = arith.constant 0 : index
    %11 = vector.load %arg4[%c128, %c0_10] : memref<512x128xf32, #tpu.memory_space<vmem>>, vector<128x128xf32>
    %cst_11 = arith.constant dense<0.000000e+00> : vector<8x128xf32>
    %12 = tpu.matmul %10, %11, %cst_11 {dimension_numbers = #tpu.dot_dimension_numbers<[1], [0], [0], [1], [0, 0, 1, 1], [], []>} : vector<8x128xf32>, vector<128x128xf32>, vector<8x128xf32> -> vector<8x128xf32>
    %13 = arith.addf %2, %12 : vector<8x128xf32>
    %c1 = arith.constant 1 : index
    %c0_12 = arith.constant 0 : index
    %c0_13 = arith.constant 0 : index
    %14 = vector.load %arg2[%c1, %c0_12, %c0_13] : memref<3x128x128xf32, #tpu.memory_space<vmem>>, vector<1x128x128xf32>
    %15 = vector.shape_cast %14 : vector<1x128x128xf32> to vector<128x128xf32>
    %c1_14 = arith.constant 1 : index
    %c0_15 = arith.constant 0 : index
    %16 = vector.load %arg3[%c1_14, %c0_15] : memref<8x128xf32, #tpu.memory_space<vmem>>, vector<1x128xf32>
    %cst_16 = arith.constant dense<0.000000e+00> : vector<8x128xf32>
    %17 = tpu.matmul %10, %15, %cst_16 {dimension_numbers = #tpu.dot_dimension_numbers<[1], [0], [0], [1], [0, 0, 1, 1], [], []>} : vector<8x128xf32>, vector<128x128xf32>, vector<8x128xf32> -> vector<8x128xf32>
    %18 = vector.broadcast %16 : vector<1x128xf32> to vector<8x128xf32>
    %19 = arith.addf %17, %18 : vector<8x128xf32>
    %cst_17 = arith.constant 0.000000e+00 : f32
    %20 = vector.broadcast %cst_17 : f32 to vector<8x128xf32>
    %21 = arith.maximumf %19, %20 : vector<8x128xf32>
    %c256 = arith.constant 256 : index
    %c0_18 = arith.constant 0 : index
    %22 = vector.load %arg4[%c256, %c0_18] : memref<512x128xf32, #tpu.memory_space<vmem>>, vector<128x128xf32>
    %cst_19 = arith.constant dense<0.000000e+00> : vector<8x128xf32>
    %23 = tpu.matmul %21, %22, %cst_19 {dimension_numbers = #tpu.dot_dimension_numbers<[1], [0], [0], [1], [0, 0, 1, 1], [], []>} : vector<8x128xf32>, vector<128x128xf32>, vector<8x128xf32> -> vector<8x128xf32>
    %24 = arith.addf %13, %23 : vector<8x128xf32>
    %c2 = arith.constant 2 : index
    %c0_20 = arith.constant 0 : index
    %c0_21 = arith.constant 0 : index
    %25 = vector.load %arg2[%c2, %c0_20, %c0_21] : memref<3x128x128xf32, #tpu.memory_space<vmem>>, vector<1x128x128xf32>
    %26 = vector.shape_cast %25 : vector<1x128x128xf32> to vector<128x128xf32>
    %c2_22 = arith.constant 2 : index
    %c0_23 = arith.constant 0 : index
    %27 = vector.load %arg3[%c2_22, %c0_23] : memref<8x128xf32, #tpu.memory_space<vmem>>, vector<1x128xf32>
    %cst_24 = arith.constant dense<0.000000e+00> : vector<8x128xf32>
    %28 = tpu.matmul %21, %26, %cst_24 {dimension_numbers = #tpu.dot_dimension_numbers<[1], [0], [0], [1], [0, 0, 1, 1], [], []>} : vector<8x128xf32>, vector<128x128xf32>, vector<8x128xf32> -> vector<8x128xf32>
    %29 = vector.broadcast %27 : vector<1x128xf32> to vector<8x128xf32>
    %30 = arith.addf %28, %29 : vector<8x128xf32>
    %cst_25 = arith.constant 0.000000e+00 : f32
    %31 = vector.broadcast %cst_25 : f32 to vector<8x128xf32>
    %32 = arith.maximumf %30, %31 : vector<8x128xf32>
    %c384 = arith.constant 384 : index
    %c0_26 = arith.constant 0 : index
    %33 = vector.load %arg4[%c384, %c0_26] : memref<512x128xf32, #tpu.memory_space<vmem>>, vector<128x128xf32>
    %cst_27 = arith.constant dense<0.000000e+00> : vector<8x128xf32>
    %34 = tpu.matmul %32, %33, %cst_27 {dimension_numbers = #tpu.dot_dimension_numbers<[1], [0], [0], [1], [0, 0, 1, 1], [], []>} : vector<8x128xf32>, vector<128x128xf32>, vector<8x128xf32> -> vector<8x128xf32>
    %35 = arith.addf %24, %34 : vector<8x128xf32>
    %c3 = arith.constant 3 : index
    %c0_28 = arith.constant 0 : index
    %36 = vector.load %arg3[%c3, %c0_28] : memref<8x128xf32, #tpu.memory_space<vmem>>, vector<1x128xf32>
    %37 = vector.broadcast %36 : vector<1x128xf32> to vector<8x128xf32>
    %38 = arith.addf %35, %37 : vector<8x128xf32>
    %cst_29 = arith.constant 0.000000e+00 : f32
    %39 = vector.broadcast %cst_29 : f32 to vector<8x128xf32>
    %40 = arith.maximumf %38, %39 : vector<8x128xf32>
    %c4 = arith.constant 4 : index
    %c0_30 = arith.constant 0 : index
    %41 = vector.load %arg3[%c4, %c0_30] : memref<8x128xf32, #tpu.memory_space<vmem>>, vector<1x128xf32>
    %c0_31 = arith.constant 0 : index
    %c0_32 = arith.constant 0 : index
    %42 = vector.load %arg5[%c0_31, %c0_32] : memref<128x128xf32, #tpu.memory_space<vmem>>, vector<128x128xf32>
    %cst_33 = arith.constant dense<0.000000e+00> : vector<8x128xf32>
    %43 = tpu.matmul %40, %42, %cst_33 {dimension_numbers = #tpu.dot_dimension_numbers<[1], [0], [0], [1], [0, 0, 1, 1], [], []>} : vector<8x128xf32>, vector<128x128xf32>, vector<8x128xf32> -> vector<8x128xf32>
    %44 = vector.broadcast %41 : vector<1x128xf32> to vector<8x128xf32>
    %45 = arith.addf %43, %44 : vector<8x128xf32>
    %c0_34 = arith.constant 0 : index
    %c0_35 = arith.constant 0 : index
    %46 = vector.load %arg6[%c0_34, %c0_35] : memref<8x128xf32, #tpu.memory_space<vmem>>, vector<8x128xf32>
    tpu.vector_store %arg6[%c0_34, %c0_35], %45 {strides = array<i32>} : memref<8x128xf32, #tpu.memory_space<vmem>>, vector<8x128xf32>,
    return
  }
  func.func @transform_0(%arg0: i32) -> (i32, i32) {
    %c0_i32 = arith.constant 0 : i32
    %c0_i32_0 = arith.constant 0 : i32
    return %arg0, %c0_i32 : i32, i32
  }
  func.func @transform_1(%arg0: i32) -> (i32, i32, i32) {
    %c0_i32 = arith.constant 0 : i32
    %c0_i32_0 = arith.constant 0 : i32
    %c0_i32_1 = arith.constant 0 : i32
    %c0_i32_2 = arith.constant 0 : i32
    return %c0_i32, %c0_i32_0, %c0_i32_1 : i32, i32, i32
  }
  func.func @transform_2(%arg0: i32) -> (i32, i32) {
    %c0_i32 = arith.constant 0 : i32
    %c0_i32_0 = arith.constant 0 : i32
    %c0_i32_1 = arith.constant 0 : i32
    return %c0_i32, %c0_i32_0 : i32, i32
  }
  func.func @transform_3(%arg0: i32) -> (i32, i32) {
    %c0_i32 = arith.constant 0 : i32
    %c0_i32_0 = arith.constant 0 : i32
    %c0_i32_1 = arith.constant 0 : i32
    return %c0_i32, %c0_i32_0 : i32, i32
  }
  func.func @transform_4(%arg0: i32) -> (i32, i32) {
    %c0_i32 = arith.constant 0 : i32
    %c0_i32_0 = arith.constant 0 : i32
    %c0_i32_1 = arith.constant 0 : i32
    return %c0_i32, %c0_i32_0 : i32, i32
  }
  func.func @transform_5(%arg0: i32) -> (i32, i32) {
    %c0_i32 = arith.constant 0 : i32
    %c0_i32_0 = arith.constant 0 : i32
    return %arg0, %c0_i32 : i32, i32
  }
}

</mosaic_0001>

<bundles_post_ra>
// kernel: tpu_custom_call.1
= control target key start
LH: loop header
LB: loop body
LE: loop exit
PB: predicated region body
PF: predicated region fallthrough
CT: control target
= control target key end

     0   :  { %10 = vsyncpa [#allocation3], 0  ;;  %s644_s0 = inlined_call_operand.hbm [shape: f32[8,128], index: 0, kind: input, shape index: {}]   ;;  %s645_s1 = inlined_call_operand.hbm [shape: f32[3,128,128], index: 1, kind: input, shape index: {}]   ;;  %s646_s2 = inlined_call_operand.hbm [shape: f32[8,128], index: 2, kind: input, shape index: {}]   ;;  %s647_s3 = inlined_call_operand.hbm [shape: f32[512,128], index: 3, kind: input, shape index: {}]   ;;  %s648_s4 = inlined_call_operand.hbm [shape: f32[128,128], index: 4, kind: input, shape index: {}]   ;;  %s649_s5 = inlined_call_operand.hbm [shape: f32[8,128], index: 5, kind: output, shape index: {}]  }
   0x1   :  { %11 = vsyncpa [#allocation6], 0 }
   0x2   :  { %12 = vsyncpa [#allocation9], 0  ;;  %s29_s20 = sshll.u32 %s645_s1, 4  ;;  %s30_s20 = int_to_ptr.hbm [resolvable:$true] %s29_s20 }
   0x3   :  { %13 = vsyncpa [#allocation4], 0  ;;  %s588_s21 = smov [#allocation5]   ;;  %s53_s25 = sshll.u32 %s647_s3, 4  ;;  %s54_s25 = int_to_ptr.hbm [resolvable:$true] %s53_s25 }
   0x4   :  { %s31_s22 = sshll.u32 %s588_s21, 4  ;;  %s589_s26 = smov 128   ;;  %s32_s22 = int_to_ptr.vmem [resolvable:$true] %s31_s22 }
   0x5   :  { %s590_s27 = smov 8   ;;  %s591_s28 = smov [#allocation8]  }
   0x6   :  { %37 = dma.hbm_to_vmem [thread:$0]  %s30_s20, 6144, %s32_s22, [#allocation6], %s589_s26, %s589_s26, %s590_s27  }
   0x7   :  { %s55_s29 = sshll.u32 %s591_s28, 4  ;;  %s19_s7 = sshll.u32 %s644_s0, 4  ;;  %s56_s29 = int_to_ptr.vmem [resolvable:$true] %s55_s29  ;;  %s20_s7 = int_to_ptr.hbm [resolvable:$true] %s19_s7 }
   0x8   :  { %61 = dma.hbm_to_vmem [thread:$0]  %s54_s25, 8192, %s56_s29, [#allocation9], %s589_s26, %s589_s26, %s590_s27  }
   0x9   :  { %s43_s9 = sshll.u32 %s646_s2, 4  ;;  %s592_s10 = smov [#allocation2]   ;;  %s44_s9 = int_to_ptr.hbm [resolvable:$true] %s43_s9 }
   0xa   :  { %s21_s11 = sshll.u32 %s592_s10, 4  ;;  %s593_s3 = smov [#allocation7]   ;;  %s22_s11 = int_to_ptr.vmem [resolvable:$true] %s21_s11 }
   0xb   :  { %24 = dma.hbm_to_vmem [thread:$0]  %s20_s7, 128, %s22_s11, [#allocation3]  }
   0xc   :  { %s45_s12 = sshll.u32 %s593_s3, 4  ;;  %s66_s15 = sshll.u32 %s648_s4, 4  ;;  %s46_s12 = int_to_ptr.vmem [resolvable:$true] %s45_s12  ;;  %s67_s15 = int_to_ptr.hbm [resolvable:$true] %s66_s15 }
   0xd   :  { %48 = dma.hbm_to_vmem [thread:$0]  %s44_s9, 128, %s46_s12, [#allocation6]  }
   0xe   :  { %s594_s0 = smov [#allocation10]  }
   0xf   :  { %s68_s16 = sshll.u32 %s594_s0, 4  ;;  %s69_s16 = int_to_ptr.vmem [resolvable:$true] %s68_s16 }
  0x10   :  { %74 = dma.hbm_to_vmem [thread:$0]  %s67_s15, 2048, %s69_s16, [#allocation9], %s589_s26, %s589_s26, %s590_s27  }
  0x11   :  { %580 = dma.done.wait [#allocation3], 128  }
  0x12   :  { %581 = vsyncadd [#allocation3], 4294967168 }
  0x13   :  { %582 = dma.done.wait [#allocation6], 6272  }
  0x14   :  { %583 = vsyncadd [#allocation6], 4294961024 }
  0x15   :  { %584 = dma.done.wait [#allocation9], 10240  }
  0x16   :  { %585 = vsyncadd [#allocation9], 4294957056  ;;  %v127_v0 = vld [vmem:[#allocation5 + $0x78] sm:$0xff]  ;;  %v126_v1 = vld [vmem:[#allocation5 + $0x70] sm:$0xff]  ;;  %s595_s2 = smov [#allocation11]   ;;  %s411_s19 = sshll.u32 %s649_s5, 4  ;;  %s412_s19 = int_to_ptr.hbm [resolvable:$true] %s411_s19 }
  0x17   :  { %130 = vmatpush.msra.mxu0 %v127_v0  ;;  %v125_v2 = vld [vmem:[#allocation5 + $0x68] sm:$0xff]  ;;  %v124_v3 = vld [vmem:[#allocation5 + $0x60] sm:$0xff]  ;;  %v123_v5 = vld [vmem:[#allocation5 + $0x58] sm:$0xff]  ;;  %s409_s4 = sshll.u32 %s595_s2, 4  ;;  %s410_s4 = int_to_ptr.vmem [resolvable:$true] %s409_s4 }
  0x18   :  { %v111_v4 = vld [vmem:[#allocation8 + $0x78] sm:$0xff]  ;;  %v110_v6 = vld [vmem:[#allocation8 + $0x70] sm:$0xff]  ;;  %v109_v8 = vld [vmem:[#allocation8 + $0x68] sm:$0xff] }
  0x19   :  { %131 = vmatpush.msra.mxu0 %v126_v1  ;;  %187 = vmatpush.msra.mxu2 %v111_v4  ;;  %v166_v7 = vld [vmem:[#allocation8 + $0xf8] sm:$0xff]  ;;  %v223_v9 = vld [vmem:[#allocation5 + $0xf8] sm:$0xff]  ;;  %v122_v11 = vld [vmem:[#allocation5 + $0x50] sm:$0xff] }
  0x1a   :  { %167 = vmatpush.msra.mxu1 %v166_v7  ;;  %v165_v10 = vld [vmem:[#allocation8 + $0xf0] sm:$0xff]  ;;  %226 = vmatpush.msra.mxu3 %v223_v9  ;;  %v222_v12 = vld [vmem:[#allocation5 + $0xf0] sm:$0xff]  ;;  %v108_v14 = vld [vmem:[#allocation8 + $0x60] sm:$0xff] }
  0x1b   :  { %132 = vmatpush.msra.mxu0 %v125_v2  ;;  %188 = vmatpush.msra.mxu2 %v110_v6  ;;  %v164_v13 = vld [vmem:[#allocation8 + $0xe8] sm:$0xff]  ;;  %v221_v15 = vld [vmem:[#allocation5 + $0xe8] sm:$0xff]  ;;  %v107_v18 = vld [vmem:[#allocation8 + $0x58] sm:$0xff] }
  0x1c   :  { %168 = vmatpush.msra.mxu1 %v165_v10  ;;  %v121_v16 = vld [vmem:[#allocation5 + $0x48] sm:$0xff]  ;;  %227 = vmatpush.msra.mxu3 %v222_v12  ;;  %v220_v19 = vld [vmem:[#allocation5 + $0xe0] sm:$0xff]  ;;  %v106_v22 = vld [vmem:[#allocation8 + $0x50] sm:$0xff] }
  0x1d   :  { %133 = vmatpush.msra.mxu0 %v124_v3  ;;  %189 = vmatpush.msra.mxu2 %v109_v8  ;;  %v163_v17 = vld [vmem:[#allocation8 + $0xe0] sm:$0xff]  ;;  %v120_v20 = vld [vmem:[#allocation5 + $0x40] sm:$0xff]  ;;  %v219_v23 = vld [vmem:[#allocation5 + $0xd8] sm:$0xff] }
  0x1e   :  { %169 = vmatpush.msra.mxu1 %v164_v13  ;;  %228 = vmatpush.msra.mxu3 %v221_v15  ;;  %v162_v21 = vld [vmem:[#allocation8 + $0xd8] sm:$0xff]  ;;  %v119_v24 = vld [vmem:[#allocation5 + $0x38] sm:$0xff]  ;;  %v105_v26 = vld [vmem:[#allocation8 + $0x48] sm:$0xff] }
  0x1f   :  { %134 = vmatpush.msra.mxu0 %v123_v5  ;;  %190 = vmatpush.msra.mxu2 %v108_v14  ;;  %v161_v25 = vld [vmem:[#allocation8 + $0xd0] sm:$0xff]  ;;  %v218_v27 = vld [vmem:[#allocation5 + $0xd0] sm:$0xff]  ;;  %v117_v30 = vld [vmem:[#allocation5 + $0x28] sm:$0xff] }
  0x20   :  { %170 = vmatpush.msra.mxu1 %v163_v17  ;;  %229 = vmatpush.msra.mxu3 %v220_v19  ;;  %v118_v28 = vld [vmem:[#allocation5 + $0x30] sm:$0xff]  ;;  %v104_v31 = vld [vmem:[#allocation8 + $0x40] sm:$0xff]  ;;  %v116_v33 = vld [vmem:[#allocation5 + $0x20] sm:$0xff] }
  0x21   :  { %135 = vmatpush.msra.mxu0 %v122_v11  ;;  %191 = vmatpush.msra.mxu2 %v107_v18  ;;  %v160_v29 = vld [vmem:[#allocation8 + $0xc8] sm:$0xff]  ;;  %v217_v32 = vld [vmem:[#allocation5 + $0xc8] sm:$0xff]  ;;  %v103_v34 = vld [vmem:[#allocation8 + $0x38] sm:$0xff] }
  0x22   :  { %171 = vmatpush.msra.mxu1 %v162_v21  ;;  %230 = vmatpush.msra.mxu3 %v219_v23  ;;  %v159_v35 = vld [vmem:[#allocation8 + $0xc0] sm:$0xff]  ;;  %v102_v36 = vld [vmem:[#allocation8 + $0x30] sm:$0xff]  ;;  %v216_v37 = vld [vmem:[#allocation5 + $0xc0] sm:$0xff] }
  0x23   :  { %136 = vmatpush.msra.mxu0 %v121_v16  ;;  %192 = vmatpush.msra.mxu2 %v106_v22  ;;  %v158_v38 = vld [vmem:[#allocation8 + $0xb8] sm:$0xff]  ;;  %v215_v39 = vld [vmem:[#allocation5 + $0xb8] sm:$0xff]  ;;  %v101_v42 = vld [vmem:[#allocation8 + $0x28] sm:$0xff] }
  0x24   :  { %172 = vmatpush.msra.mxu1 %v161_v25  ;;  %231 = vmatpush.msra.mxu3 %v218_v27  ;;  %v115_v40 = vld [vmem:[#allocation5 + $0x18] sm:$0xff]  ;;  %v214_v43 = vld [vmem:[#allocation5 + $0xb0] sm:$0xff]  ;;  %v100_v46 = vld [vmem:[#allocation8 + $0x20] sm:$0xff] }
  0x25   :  { %137 = vmatpush.msra.mxu0 %v120_v20  ;;  %193 = vmatpush.msra.mxu2 %v105_v26  ;;  %v157_v41 = vld [vmem:[#allocation8 + $0xb0] sm:$0xff]  ;;  %v114_v44 = vld [vmem:[#allocation5 + $0x10] sm:$0xff]  ;;  %v213_v47 = vld [vmem:[#allocation5 + $0xa8] sm:$0xff] }
  0x26   :  { %173 = vmatpush.msra.mxu1 %v160_v29  ;;  %232 = vmatpush.msra.mxu3 %v217_v32  ;;  %v156_v45 = vld [vmem:[#allocation8 + $0xa8] sm:$0xff]  ;;  %v113_v48 = vld [vmem:[#allocation5 + $0x8] sm:$0xff]  ;;  %v99_v50 = vld [vmem:[#allocation8 + $0x18] sm:$0xff] }
  0x27   :  { %138 = vmatpush.msra.mxu0 %v119_v24  ;;  %194 = vmatpush.msra.mxu2 %v104_v31  ;;  %v155_v49 = vld [vmem:[#allocation8 + $0xa0] sm:$0xff]  ;;  %v212_v51 = vld [vmem:[#allocation5 + $0xa0] sm:$0xff]  ;;  %v95_v54 = vld [vmem:[#allocation2] sm:$0xff] }
  0x28   :  { %174 = vmatpush.msra.mxu1 %v159_v35  ;;  %233 = vmatpush.msra.mxu3 %v216_v37  ;;  %v112_v52 = vld [vmem:[#allocation5] sm:$0xff]  ;;  %v98_v55 = vld [vmem:[#allocation8 + $0x10] sm:$0xff]  ;;  %v97_v57 = vld [vmem:[#allocation8 + $0x8] sm:$0xff] }
  0x29   :  { %139 = vmatpush.msra.mxu0 %v118_v28  ;;  %195 = vmatpush.msra.mxu2 %v103_v34  ;;  %v154_v53 = vld [vmem:[#allocation8 + $0x98] sm:$0xff]  ;;  %v211_v56 = vld [vmem:[#allocation5 + $0x98] sm:$0xff]  ;;  %v96_v58 = vld [vmem:[#allocation8] sm:$0xff] }
  0x2a   :  { %175 = vmatpush.msra.mxu1 %v158_v38  ;;  %234 = vmatpush.msra.mxu3 %v215_v39  ;;  %v153_v59 = vld [vmem:[#allocation8 + $0x90] sm:$0xff]  ;;  %v210_v60 = vld [vmem:[#allocation5 + $0x90] sm:$0xff]  ;;  %v209_v62 = vld [vmem:[#allocation5 + $0x88] sm:$0xff] }
  0x2b   :  { %140 = vmatpush.msra.mxu0 %v117_v30  ;;  %196 = vmatpush.msra.mxu2 %v102_v36  ;;  %v152_v61 = vld [vmem:[#allocation8 + $0x88] sm:$0xff]  ;;  %v151_v63 = vld [vmem:[#allocation8 + $0x80] sm:$0xff]  ;;  %v208_v0 = vld [vmem:[#allocation5 + $0x80] sm:$0xff] }
  0x2c   :  { %176 = vmatpush.msra.mxu1 %v157_v41  ;;  %235 = vmatpush.msra.mxu3 %v214_v43  ;;  %v262_v1 = vld [vmem:[#allocation8 + $0x178] sm:$0xff]  ;;  %v300_v2 = vld [vmem:[#allocation5 + $0x178] sm:$0xff]  ;;  %v299_v4 = vld [vmem:[#allocation5 + $0x170] sm:$0xff] }
  0x2d   :  { %141 = vmatpush.msra.mxu0 %v116_v33  ;;  %197 = vmatpush.msra.mxu2 %v101_v42  ;;  %v261_v3 = vld [vmem:[#allocation8 + $0x170] sm:$0xff]  ;;  %v260_v5 = vld [vmem:[#allocation8 + $0x168] sm:$0xff]  ;;  %v298_v6 = vld [vmem:[#allocation5 + $0x168] sm:$0xff] }
  0x2e   :  { %177 = vmatpush.msra.mxu1 %v156_v45  ;;  %236 = vmatpush.msra.mxu3 %v213_v47  ;;  %v259_v7 = vld [vmem:[#allocation8 + $0x160] sm:$0xff]  ;;  %v297_v8 = vld [vmem:[#allocation5 + $0x160] sm:$0xff]  ;;  %v296_v10 = vld [vmem:[#allocation5 + $0x158] sm:$0xff] }
  0x2f   :  { %142 = vmatpush.msra.mxu0 %v115_v40  ;;  %198 = vmatpush.msra.mxu2 %v100_v46  ;;  %v258_v9 = vld [vmem:[#allocation8 + $0x158] sm:$0xff]  ;;  %v257_v11 = vld [vmem:[#allocation8 + $0x150] sm:$0xff]  ;;  %v295_v12 = vld [vmem:[#allocation5 + $0x150] sm:$0xff] }
  0x30   :  { %178 = vmatpush.msra.mxu1 %v155_v49  ;;  %237 = vmatpush.msra.mxu3 %v212_v51  ;;  %v256_v13 = vld [vmem:[#allocation8 + $0x148] sm:$0xff]  ;;  %v294_v14 = vld [vmem:[#allocation5 + $0x148] sm:$0xff]  ;;  %v293_v16 = vld [vmem:[#allocation5 + $0x140] sm:$0xff] }
  0x31   :  { %143 = vmatpush.msra.mxu0 %v114_v44  ;;  %199 = vmatpush.msra.mxu2 %v99_v50  ;;  %v255_v15 = vld [vmem:[#allocation8 + $0x140] sm:$0xff]  ;;  %v254_v17 = vld [vmem:[#allocation8 + $0x138] sm:$0xff]  ;;  %v292_v18 = vld [vmem:[#allocation5 + $0x138] sm:$0xff] }
  0x32   :  { %179 = vmatpush.msra.mxu1 %v154_v53  ;;  %238 = vmatpush.msra.mxu3 %v211_v56  ;;  %v253_v19 = vld [vmem:[#allocation8 + $0x130] sm:$0xff]  ;;  %v291_v20 = vld [vmem:[#allocation5 + $0x130] sm:$0xff]  ;;  %v431_v21 = vld [vmem:[#allocation7] ss:$0 sm:$0xff] }
  0x33   :  { %144 = vmatpush.msra.mxu0 %v113_v48  ;;  %200 = vmatpush.msra.mxu2 %v98_v55  ;;  %v252_v25 = vld [vmem:[#allocation8 + $0x128] sm:$0xff]  ;;  %v290_v26 = vld [vmem:[#allocation5 + $0x128] sm:$0xff]  ;;  %v289_v28 = vld [vmem:[#allocation5 + $0x120] sm:$0xff] }
  0x34   :  { %180 = vmatpush.msra.mxu1 %v153_v59  ;;  %239 = vmatpush.msra.mxu3 %v210_v60  ;;  %v251_v27 = vld [vmem:[#allocation8 + $0x120] sm:$0xff]  ;;  %v250_v29 = vld [vmem:[#allocation8 + $0x118] sm:$0xff]  ;;  %v288_v30 = vld [vmem:[#allocation5 + $0x118] sm:$0xff] }
  0x35   :  { %145 = vmatpush.msra.mxu0 %v112_v52  ;;  %201 = vmatpush.msra.mxu2 %v97_v57  ;;  %v249_v31 = vld [vmem:[#allocation8 + $0x110] sm:$0xff]  ;;  %v287_v32 = vld [vmem:[#allocation5 + $0x110] sm:$0xff]  ;;  %v286_v34 = vld [vmem:[#allocation5 + $0x108] sm:$0xff] }
  0x36   :  { %146 = vmatmul.f32.vlgmr.msra.gmra.mxu0 %v95_v54  ;;  %181 = vmatpush.msra.mxu1 %v152_v61  ;;  %v248_v33 = vld [vmem:[#allocation8 + $0x108] sm:$0xff]  ;;  %v247_v35 = vld [vmem:[#allocation8 + $0x100] sm:$0xff]  ;;  %v285_v36 = vld [vmem:[#allocation5 + $0x100] sm:$0xff] }
  0x37   :  { %202 = vmatpush.msra.mxu2 %v96_v58  ;;  %240 = vmatpush.msra.mxu3 %v209_v62  ;;  %v339_v37 = vld [vmem:[#allocation8 + $0x1f8] sm:$0xff]  ;;  %v338_v38 = vld [vmem:[#allocation8 + $0x1f0] sm:$0xff]  ;;  %v337_v39 = vld [vmem:[#allocation8 + $0x1e8] sm:$0xff] }
  0x38   :  { %203 = vmatmul.f32.vlgmr.msra.gmra.mxu2 %v95_v54  ;;  %182 = vmatpush.msra.mxu1 %v151_v63  ;;  %v336_v40 = vld [vmem:[#allocation8 + $0x1e0] sm:$0xff]  ;;  %v335_v41 = vld [vmem:[#allocation8 + $0x1d8] sm:$0xff]  ;;  %v334_v42 = vld [vmem:[#allocation8 + $0x1d0] sm:$0xff] }
  0x39   :  { %241 = vmatpush.msra.mxu3 %v208_v0  ;;  %263 = vmatpush.msrb.mxu0 %v262_v1  ;;  %v333_v43 = vld [vmem:[#allocation8 + $0x1c8] sm:$0xff]  ;;  %v332_v44 = vld [vmem:[#allocation8 + $0x1c0] sm:$0xff]  ;;  %v331_v45 = vld [vmem:[#allocation8 + $0x1b8] sm:$0xff] }
  0x3a   :  { %303 = vmatpush.msrb.mxu1 %v300_v2  ;;  %340 = vmatpush.msrb.mxu2 %v339_v37  ;;  %v330_v46 = vld [vmem:[#allocation8 + $0x1b0] sm:$0xff]  ;;  %v329_v47 = vld [vmem:[#allocation8 + $0x1a8] sm:$0xff]  ;;  %v328_v48 = vld [vmem:[#allocation8 + $0x1a0] sm:$0xff] }
  0x3b   :  { %264 = vmatpush.msrb.mxu0 %v261_v3  ;;  %v327_v49 = vld [vmem:[#allocation8 + $0x198] sm:$0xff]  ;;  %v326_v54 = vld [vmem:[#allocation8 + $0x190] sm:$0xff]  ;;  %v325_v55 = vld [vmem:[#allocation8 + $0x188] sm:$0xff] }
  0x3c   :  { %304 = vmatpush.msrb.mxu1 %v299_v4  ;;  %341 = vmatpush.msrb.mxu2 %v338_v38  ;;  %v432_v50 = vld [vmem:[#allocation7 + $0x1] ss:$0 sm:$0xff]  ;;  %v324_v56 = vld [vmem:[#allocation8 + $0x180] sm:$0xff]  ;;  %v380_v58 = vld [vmem:[#allocation10 + $0x70] sm:$0xff] }
  0x3d   :  { %265 = vmatpush.msrb.mxu0 %v260_v5  ;;  %v381_v57 = vld [vmem:[#allocation10 + $0x78] sm:$0xff]  ;;  %v379_v59 = vld [vmem:[#allocation10 + $0x68] sm:$0xff]  ;;  %v378_v60 = vld [vmem:[#allocation10 + $0x60] sm:$0xff] }
  0x3e   :  { %305 = vmatpush.msrb.mxu1 %v298_v6  ;;  %342 = vmatpush.msrb.mxu2 %v337_v39  ;;  %v377_v61 = vld [vmem:[#allocation10 + $0x58] sm:$0xff]  ;;  %v376_v62 = vld [vmem:[#allocation10 + $0x50] sm:$0xff]  ;;  %v375_v63 = vld [vmem:[#allocation10 + $0x48] sm:$0xff] }
  0x3f   :  { %266 = vmatpush.msrb.mxu0 %v259_v7  ;;  %383 = vmatpush.msrb.mxu3 %v381_v57  ;;  %v374_v0 = vld [vmem:[#allocation10 + $0x40] sm:$0xff]  ;;  %v373_v1 = vld [vmem:[#allocation10 + $0x38] sm:$0xff]  ;;  %v372_v2 = vld [vmem:[#allocation10 + $0x30] sm:$0xff] }
  0x40   :  { %306 = vmatpush.msrb.mxu1 %v297_v8  ;;  %343 = vmatpush.msrb.mxu2 %v336_v40  ;;  %v371_v3 = vld [vmem:[#allocation10 + $0x28] sm:$0xff]  ;;  %v370_v5 = vld [vmem:[#allocation10 + $0x20] sm:$0xff]  ;;  %v433_v6 = vld [vmem:[#allocation7 + $0x2] ss:$0 sm:$0xff] }
  0x41   :  { %267 = vmatpush.msrb.mxu0 %v258_v9  ;;  %384 = vmatpush.msrb.mxu3 %v380_v58 }
  0x42   :  { %307 = vmatpush.msrb.mxu1 %v296_v10  ;;  %344 = vmatpush.msrb.mxu2 %v335_v41  ;;  %v369_v10 = vld [vmem:[#allocation10 + $0x18] sm:$0xff] }
  0x43   :  { %268 = vmatpush.msrb.mxu0 %v257_v11  ;;  %385 = vmatpush.msrb.mxu3 %v379_v59  ;;  %v368_v11 = vld [vmem:[#allocation10 + $0x10] sm:$0xff] }
  0x44   :  { %308 = vmatpush.msrb.mxu1 %v295_v12  ;;  %345 = vmatpush.msrb.mxu2 %v334_v42  ;;  %v367_v12 = vld [vmem:[#allocation10 + $0x8] sm:$0xff] }
  0x45   :  { %269 = vmatpush.msrb.mxu0 %v256_v13  ;;  %386 = vmatpush.msrb.mxu3 %v378_v60  ;;  %v366_v13 = vld [vmem:[#allocation10] sm:$0xff] }
  0x46   :  { %309 = vmatpush.msrb.mxu1 %v294_v14  ;;  %346 = vmatpush.msrb.mxu2 %v333_v43 }
  0x47   :  { %270 = vmatpush.msrb.mxu0 %v255_v15  ;;  %387 = vmatpush.msrb.mxu3 %v377_v61 }
  0x48   :  { %310 = vmatpush.msrb.mxu1 %v293_v16  ;;  %347 = vmatpush.msrb.mxu2 %v332_v44 }
  0x49   :  { %271 = vmatpush.msrb.mxu0 %v254_v17  ;;  %388 = vmatpush.msrb.mxu3 %v376_v62 }
  0x4a   :  { %311 = vmatpush.msrb.mxu1 %v292_v18  ;;  %348 = vmatpush.msrb.mxu2 %v331_v45  ;;  %v434_v18 = vld [vmem:[#allocation7 + $0x3] ss:$0 sm:$0xff] }
  0x4b   :  { %272 = vmatpush.msrb.mxu0 %v253_v19  ;;  %389 = vmatpush.msrb.mxu3 %v375_v63 }
  0x4c   :  { %312 = vmatpush.msrb.mxu1 %v291_v20  ;;  %349 = vmatpush.msrb.mxu2 %v330_v46 }
  0x4d   :  { %273 = vmatpush.msrb.mxu0 %v252_v25  ;;  %390 = vmatpush.msrb.mxu3 %v374_v0 }
  0x4e   :  { %313 = vmatpush.msrb.mxu1 %v290_v26  ;;  %350 = vmatpush.msrb.mxu2 %v329_v47 }
  0x4f   :  { %274 = vmatpush.msrb.mxu0 %v251_v27  ;;  %391 = vmatpush.msrb.mxu3 %v373_v1 }
  0x50   :  { %314 = vmatpush.msrb.mxu1 %v289_v28  ;;  %351 = vmatpush.msrb.mxu2 %v328_v48 }
  0x51   :  { %275 = vmatpush.msrb.mxu0 %v250_v29  ;;  %392 = vmatpush.msrb.mxu3 %v372_v2 }
  0x52   :  { %315 = vmatpush.msrb.mxu1 %v288_v30  ;;  %352 = vmatpush.msrb.mxu2 %v327_v49 }
  0x53   :  { %276 = vmatpush.msrb.mxu0 %v249_v31  ;;  %393 = vmatpush.msrb.mxu3 %v371_v3 }
  0x54   :  { %316 = vmatpush.msrb.mxu1 %v287_v32  ;;  %353 = vmatpush.msrb.mxu2 %v326_v54 }
  0x55   :  { %277 = vmatpush.msrb.mxu0 %v248_v33  ;;  %394 = vmatpush.msrb.mxu3 %v370_v5 }
  0x56   :  { %317 = vmatpush.msrb.mxu1 %v286_v34  ;;  %354 = vmatpush.msrb.mxu2 %v325_v55 }
  0x57   :  { %278 = vmatpush.msrb.mxu0 %v247_v35  ;;  %395 = vmatpush.msrb.mxu3 %v369_v10 }
  0x58   :  { %318 = vmatpush.msrb.mxu1 %v285_v36  ;;  %355 = vmatpush.msrb.mxu2 %v324_v56 }
  0x59   :  { %396 = vmatpush.msrb.mxu3 %v368_v11 }
  0x5b   :  { %397 = vmatpush.msrb.mxu3 %v367_v12 }
  0x5d   :  { %398 = vmatpush.msrb.mxu3 %v366_v13 }
  0xb3   :  { %v147_v22 = vpop.f32.mrf.mxu0 }
  0xb4   :  { %v148_v23 = vadd.f32 %v431_v21, %v147_v22 }
  0xb6   :  { %v150_v24 = vmax.f32 %v148_v23, 0.0  ;;  %v435_v23 = vld [vmem:[#allocation7 + $0x4] ss:$0 sm:$0xff] }
  0xb8   :  { %183 = vmatmul.f32.vlgmr.msra.gmra.mxu1 %v150_v24  ;;  %242 = vmatmul.f32.vlgmr.msra.gmra.mxu3 %v150_v24 }
  0xbb   :  { %v204_v14 = vpop.f32.mrf.mxu2 }
 0x135   :  { %v184_v4 = vpop.f32.mrf.mxu1 }
 0x136   :  { %v205_v16 = vadd.f32 %v204_v14, %v184_v4 }
 0x13b   :  { %v243_v51 = vpop.f32.mrf.mxu3 }
 0x13c   :  { %v244_v52 = vadd.f32 %v432_v50, %v243_v51 }
 0x13e   :  { %v246_v53 = vmax.f32 %v244_v52, 0.0 }
 0x140   :  { %279 = vmatmul.f32.vlgmr.msrb.gmra.mxu0 %v246_v53  ;;  %319 = vmatmul.f32.vlgmr.msrb.gmra.mxu1 %v246_v53 }
 0x1bd   :  { %v320_v7 = vpop.f32.mrf.mxu1  ;;  %v280_v15 = vpop.f32.mrf.mxu0 }
 0x1be   :  { %v321_v8 = vadd.f32 %v433_v6, %v320_v7  ;;  %v283_v17 = vadd.f32 %v280_v15, %v205_v16 }
 0x1c0   :  { %v323_v9 = vmax.f32 %v321_v8, 0.0 }
 0x1c2   :  { %356 = vmatmul.f32.vlgmr.msrb.gmra.mxu2 %v323_v9 }
 0x245   :  { %v357_v19 = vpop.f32.mrf.mxu2 }
 0x246   :  { %v360_v20 = vadd.f32 %v357_v19, %v283_v17 }
 0x248   :  { %v363_v21 = vadd.f32 %v434_v18, %v360_v20 }
 0x24a   :  { %v364_v22 = vmax.f32 %v363_v21, 0.0 }
 0x24c   :  { %399 = vmatmul.f32.vlgmr.msrb.gmra.mxu3 %v364_v22 }
 0x2cf   :  { %v400_v24 = vpop.f32.mrf.mxu3 }
 0x2d0   :  { %v401_v25 = vadd.f32 %v435_v23, %v400_v24 }
 0x2d2   :  { %403 = vst [vmem:[#allocation11] sm:$0xff] %v401_v25 }
 0x2d3   :  { %414 = dma.vmem_to_hbm [thread:$0]  %s410_s4, 128, %s412_s19, [#allocation4]  }
 0x2d4   :  { %586 = dma.done.wait [#allocation4], 128  }
 0x2d5   :  { %587 = vsyncadd [#allocation4], 4294967168 }
 0x2d6   :  { %419 = vsyncpa [#allocation3], 1 }
 0x2d7   :  { %420 = vsyncpa [#allocation6], 1 }
 0x2d8   :  { %421 = vsyncpa [#allocation9], 1 }
 0x2d9   :  { %422 = vsyncpa [#allocation4], 1 }

</bundles_post_ra>
